<compile_context>
chip_gen: v7x
topology: tpu7x:2x2x1
jax: 0.10.0
libtpu: 0.0.40
codegen_flags: <defaults>
</compile_context>

<pallas_src>
import functools
import math

import jax
import jax.numpy as jnp
import numpy as np
from jax.experimental import pallas as pl
from jax.experimental.pallas import tpu as pltpu


def calculate_conv1d_padding(stride, kernel_size, d_in, d_out, dilation=1):
    padding = math.ceil(
        (stride * (d_out - 1) - d_in + dilation * (kernel_size - 1) + 1) / 2)
    assert padding >= 0, 'Padding value must be greater than or equal to 0.'
    return padding


def _round_up(v, m):
    return (v + m - 1) // m * m


def _resblock_kernel(x_ref, w13_ref, b13_ref, w2_ref, b2_ref, masks_ref,
                     o_ref, *, C2p, k, dilation, pad, mm_dtype, nb, use_roll):
    """One grid step: nb batch samples, each a (C, L) slab (L on lanes)."""
    w13 = w13_ref[...]                       # (C2p + C, C)  mm_dtype
    b13 = b13_ref[...]                       # (C2p + C, 1)  f32
    b2 = b2_ref[...]                         # (C, 1)        f32
    masks = masks_ref[...] if use_roll else None   # (k, 1, L) f32

    for b in range(nb):                      # static unroll; nb kept small
        x = x_ref[b]                         # (C, L) f32
        xm = x.astype(mm_dtype)

        # ---- fused 1x1 convs: rows [conv1(BN folded, padded) ; atten] ------
        z = jnp.dot(w13, xm, preferred_element_type=jnp.float32) + b13
        h = jnp.maximum(z[:C2p, :], 0.0)     # (C2p, L) f32  (aligned split)
        a = jax.nn.sigmoid(z[C2p:, :])       # (C,   L) f32
        L = h.shape[1]

        # ---- conv2 (+BN2 folded, +ReLU): per-tap matmul accumulation -------
        acc = None
        if use_roll:
            hm0 = h.astype(mm_dtype)
            for t in range(k):               # static tap loop
                s = t * dilation - pad
                if s == 0:
                    v = hm0
                else:
                    # lane roll (XLU slot) + precomputed 0/1 edge mask (VPU)
                    v = (pltpu.roll(h, shift=(-s) % L, axis=1)
                         * masks[t]).astype(mm_dtype)
                p = jnp.dot(w2_ref[t], v, preferred_element_type=jnp.float32)
                acc = p if acc is None else acc + p
        else:
            # small / non-128-multiple L fallback: zero-pad + static slices
            rpad = max(0, (k - 1) * dilation - pad)
            parts = []
            if pad > 0:
                parts.append(jnp.zeros((C2p, pad), h.dtype))
            parts.append(h)
            if rpad > 0:
                parts.append(jnp.zeros((C2p, rpad), h.dtype))
            hp = jnp.concatenate(parts, axis=1) if len(parts) > 1 else h
            for t in range(k):
                off = t * dilation
                v = hp[:, off:off + L].astype(mm_dtype)
                p = jnp.dot(w2_ref[t], v, preferred_element_type=jnp.float32)
                acc = p if acc is None else acc + p

        conv_out = jnp.maximum(acc + b2, 0.0)

        # ---- attention gating + residual (f32), dense (C, L) store ---------
        o_ref[b] = (x * a + conv_out).astype(o_ref.dtype)


def _choose_batch_block(N, C, L, *, target_grid=8,
                        vmem_budget_bytes=24 * 1024 * 1024, max_unroll=32):
    """Biggest per-step batch block that (a) keeps ~24*C*L*4 bytes/sample of
    in/out double-buffers + intermediates inside a conservative VMEM budget
    (safe for v7x's 64 MiB per TC) and (b) leaves grid >= min(N, target_grid)
    so the software pipeline / megacore split actually engage."""
    per_sample = 24 * C * L * 4
    nb = min(N,
             max(1, vmem_budget_bytes // per_sample),
             max(1, N // target_grid),
             max_unroll)
    nb = max(1, nb)
    while N % nb:
        nb -= 1
    return nb


def resblock_1d_with_attention(x, w1f, b1f, w2f_taps, b2f, w3, b3, *,
                               kernel_size, dilation, pad,
                               batch_block=None, use_bf16=True):
    """x: (N, C, L) f32.  BN-folded params:
       w1f (C2, C), b1f (C2, 1), w2f_taps (k, C, C2), b2f (C, 1),
       w3 (C, C), b3 (C, 1).  Returns (N, C, L)."""
    N, C, L = x.shape
    C2 = w1f.shape[0]
    k = kernel_size
    mm_dtype = jnp.bfloat16 if use_bf16 else x.dtype

    # pad conv1 output rows / conv2 contraction columns to a sublane multiple
    # so the in-kernel z row split (z[:C2p], z[C2p:]) is tile-aligned.
    C2p = _round_up(max(C2, 1), 8)
    w1p = jnp.pad(w1f, ((0, C2p - C2), (0, 0)))
    b1p = jnp.pad(b1f, ((0, C2p - C2), (0, 0)))
    w2p = jnp.pad(w2f_taps, ((0, 0), (0, 0), (0, C2p - C2))).astype(mm_dtype)

    # stacked 1x1 weights/biases: rows = [conv1 (BN folded, padded) ; atten]
    w13 = jnp.concatenate([w1p, w3], axis=0).astype(mm_dtype)      # (C2p+C, C)
    b13 = jnp.concatenate([b1p, b3], axis=0).astype(jnp.float32)   # (C2p+C, 1)
    b2c = b2f.astype(jnp.float32)                                  # (C, 1)

    # precomputed per-tap validity masks: 1 where the shifted source index
    # l + (t*dilation - pad) lies in [0, L)  (replaces in-kernel iota % L).
    lane = np.arange(L)
    masks_np = np.stack(
        [((lane + (t * dilation - pad) >= 0) &
          (lane + (t * dilation - pad) < L)).astype(np.float32)
         for t in range(k)], axis=0)[:, None, :]                   # (k, 1, L)
    masks = jnp.asarray(masks_np)

    use_roll = (L % 128 == 0)

    nb = batch_block if batch_block is not None else _choose_batch_block(N, C, L)
    assert N % nb == 0, "batch_block must divide N"
    grid_steps = N // nb

    # explicit scoped-VMEM limit: 2x double-buffered in/out blocks +
    # intermediate headroom + (double-buffered) weights, with 2x margin.
    block_bytes = nb * C * L * 4
    weight_bytes = (w13.size + w2p.size) * (2 if use_bf16 else 4) \
        + (b13.size + b2c.size + masks.size) * 4
    vmem_need = 4 * block_bytes + 20 * block_bytes + 2 * int(weight_bytes)
    vmem_limit = int(min(48 * 1024 * 1024,
                         max(8 * 1024 * 1024, 2 * vmem_need)))

    kernel = functools.partial(
        _resblock_kernel, C2p=C2p, k=k, dilation=dilation, pad=pad,
        mm_dtype=mm_dtype, nb=nb, use_roll=use_roll)

    flops = 2 * N * L * C * (C2p + C) + 2 * N * L * k * C * C2p + 5 * N * C * L
    bytes_accessed = 2 * N * C * L * 4 + int(weight_bytes)

    # NOTE: the weight/bias/mask operands have constant index_maps, so Pallas
    # only DMAs them once; pl.Buffered(1) could shave their second buffer but
    # is skipped here for portability.
    out = pl.pallas_call(
        kernel,
        out_shape=jax.ShapeDtypeStruct((N, C, L), x.dtype),
        grid_spec=pltpu.PrefetchScalarGridSpec(
            num_scalar_prefetch=0,
            grid=(grid_steps,),
            in_specs=[
                pl.BlockSpec((nb, C, L), lambda i: (i, 0, 0)),       # x
                pl.BlockSpec((C2p + C, C), lambda i: (0, 0)),        # w13
                pl.BlockSpec((C2p + C, 1), lambda i: (0, 0)),        # b13
                pl.BlockSpec((k, C, C2p), lambda i: (0, 0, 0)),      # w2 taps
                pl.BlockSpec((C, 1), lambda i: (0, 0)),              # b2
                pl.BlockSpec((k, 1, L), lambda i: (0, 0, 0)),        # tap masks
            ],
            out_specs=pl.BlockSpec((nb, C, L), lambda i: (i, 0, 0)),
        ),
        compiler_params=pltpu.CompilerParams(
            dimension_semantics=("parallel",),
            vmem_limit_bytes=vmem_limit),
        cost_estimate=pl.CostEstimate(
            flops=int(flops), transcendentals=int(N * C * L),
            bytes_accessed=int(bytes_accessed)),
    )(x, w13, b13, w2p, b2c, masks)
    return out


def _reference(x, w1f, b1f, w2f_taps, b2f, w3, b3, *, pad, dilation, k,
               use_bf16=True):
    """Pure-JAX reference using the same folded params and matmul dtypes."""
    N, C, L = x.shape
    mm = jnp.bfloat16 if use_bf16 else x.dtype
    xm = x.astype(mm)
    h = jnp.maximum(
        jnp.einsum('oc,ncl->nol', w1f.astype(mm), xm,
                   preferred_element_type=jnp.float32) + b1f[None], 0.0)
    hm = h.astype(mm)
    hpad = jnp.pad(hm, ((0, 0), (0, 0), (pad, pad)))
    acc = jnp.zeros((N, C, L), jnp.float32)
    for t in range(k):
        off = t * dilation
        acc = acc + jnp.einsum('oc,ncl->nol', w2f_taps[t].astype(mm),
                               hpad[:, :, off:off + L],
                               preferred_element_type=jnp.float32)
    conv_out = jnp.maximum(acc + b2f[None], 0.0)
    a = jax.nn.sigmoid(
        jnp.einsum('oc,ncl->nol', w3.astype(mm), xm,
                   preferred_element_type=jnp.float32) + b3[None])
    return x * a + conv_out


def _make_params(key, C, kernel_size, eps=1e-5):
    """Raw conv/BN params (like the PyTorch module) -> BN-folded kernel params."""
    C2 = C // 2
    ks = jax.random.split(key, 14)
    w1 = jax.random.normal(ks[0], (C2, C), jnp.float32) * 0.2
    b1 = jax.random.normal(ks[1], (C2,), jnp.float32) * 0.1
    g1 = 1.0 + 0.1 * jax.random.normal(ks[2], (C2,), jnp.float32)
    be1 = 0.1 * jax.random.normal(ks[3], (C2,), jnp.float32)
    m1 = 0.1 * jax.random.normal(ks[4], (C2,), jnp.float32)
    v1 = jnp.abs(1.0 + 0.1 * jax.random.normal(ks[5], (C2,), jnp.float32))
    w2 = jax.random.normal(ks[6], (C, C2, kernel_size), jnp.float32) * 0.2
    b2 = jax.random.normal(ks[7], (C,), jnp.float32) * 0.1
    g2 = 1.0 + 0.1 * jax.random.normal(ks[8], (C,), jnp.float32)
    be2 = 0.1 * jax.random.normal(ks[9], (C,), jnp.float32)
    m2 = 0.1 * jax.random.normal(ks[10], (C,), jnp.float32)
    v2 = jnp.abs(1.0 + 0.1 * jax.random.normal(ks[11], (C,), jnp.float32))
    w3 = jax.random.normal(ks[12], (C, C), jnp.float32) * 0.2
    b3 = jax.random.normal(ks[13], (C,), jnp.float32) * 0.1

    s1 = g1 / jnp.sqrt(v1 + eps)
    w1f = w1 * s1[:, None]                               # (C2, C)
    b1f = (s1 * (b1 - m1) + be1)[:, None]                # (C2, 1)
    s2 = g2 / jnp.sqrt(v2 + eps)
    w2f = w2 * s2[:, None, None]                         # (C, C2, k)
    w2f_taps = jnp.transpose(w2f, (2, 0, 1))             # (k, C, C2)
    b2f = (s2 * (b2 - m2) + be2)[:, None]                # (C, 1)
    b3c = b3[:, None]                                    # (C, 1)
    return w1f, b1f, w2f_taps, b2f, w3, b3c


def _run_case(seed, N, C, L, kernel_size, dilation):
    stride = 1
    pad = calculate_conv1d_padding(stride, kernel_size, L, L, dilation)
    key = jax.random.PRNGKey(seed)
    kx, kp = jax.random.split(key)
    x = jax.random.normal(kx, (N, C, L), jnp.float32)
    params = _make_params(kp, C, kernel_size)
    out = resblock_1d_with_attention(
        x, *params, kernel_size=kernel_size, dilation=dilation, pad=pad,
        use_bf16=True)
    out = jax.block_until_ready(out)
    ref = _reference(x, *params, pad=pad, dilation=dilation, k=kernel_size,
                     use_bf16=True)
    np.testing.assert_allclose(np.asarray(out), np.asarray(ref),
                               rtol=1e-2, atol=1e-2)


if __name__ == "__main__":
    # Small shapes consistent with the module (batch=2, in_channel=8):
    #   case 1: in_dim=16  -> zero-pad/slice fallback path (L not a x128)
    #   case 2: in_dim=128 -> pltpu.roll + precomputed-mask path, dilation=2
    _run_case(0, N=2, C=8, L=16, kernel_size=3, dilation=1)
    _run_case(1, N=2, C=8, L=128, kernel_size=3, dilation=2)
    print("KERNEL_OK")
</pallas_src>

<mosaic_0001>
module attributes {stable_mosaic.version = 11 : i64} {
  func.func @_resblock_kernel(%arg0: i32, %arg1: memref<1x8x16xf32, #tpu.memory_space<vmem>>, %arg2: memref<16x8xbf16, #tpu.memory_space<vmem>>, %arg3: memref<16x1xf32, #tpu.memory_space<vmem>>, %arg4: memref<3x8x8xbf16, #tpu.memory_space<vmem>>, %arg5: memref<8x1xf32, #tpu.memory_space<vmem>>, %arg6: memref<3x1x16xf32, #tpu.memory_space<vmem>>, %arg7: memref<1x8x16xf32, #tpu.memory_space<vmem>>) attributes {dimension_semantics = [#tpu.dimension_semantics<parallel>], iteration_bounds = array<i64: 2>, scalar_prefetch = 0 : i64, scratch_operands = 0 : i64, tpu.core_type = #tpu.core_type<tc>, window_params = [{transform_indices = @transform_0, window_bounds = array<i64: 1, 8, 16>}, {pipeline_mode = #tpu.pipeline_mode<synchronous>, transform_indices = @transform_1, window_bounds = array<i64: 16, 8>}, {pipeline_mode = #tpu.pipeline_mode<synchronous>, transform_indices = @transform_2, window_bounds = array<i64: 16, 1>}, {pipeline_mode = #tpu.pipeline_mode<synchronous>, transform_indices = @transform_3, window_bounds = array<i64: 3, 8, 8>}, {pipeline_mode = #tpu.pipeline_mode<synchronous>, transform_indices = @transform_4, window_bounds = array<i64: 8, 1>}, {pipeline_mode = #tpu.pipeline_mode<synchronous>, transform_indices = @transform_5, window_bounds = array<i64: 3, 1, 16>}, {transform_indices = @transform_6, window_bounds = array<i64: 1, 8, 16>}]} {
    %c0 = arith.constant 0 : index
    %c0_0 = arith.constant 0 : index
    %0 = vector.load %arg2[%c0, %c0_0] : memref<16x8xbf16, #tpu.memory_space<vmem>>, vector<16x8xbf16>
    %c0_1 = arith.constant 0 : index
    %c0_2 = arith.constant 0 : index
    %1 = vector.load %arg3[%c0_1, %c0_2] : memref<16x1xf32, #tpu.memory_space<vmem>>, vector<16x1xf32>
    %c0_3 = arith.constant 0 : index
    %c0_4 = arith.constant 0 : index
    %2 = vector.load %arg5[%c0_3, %c0_4] : memref<8x1xf32, #tpu.memory_space<vmem>>, vector<8x1xf32>
    %c0_5 = arith.constant 0 : index
    %c0_6 = arith.constant 0 : index
    %c0_7 = arith.constant 0 : index
    %3 = vector.load %arg1[%c0_5, %c0_6, %c0_7] : memref<1x8x16xf32, #tpu.memory_space<vmem>>, vector<1x8x16xf32>
    %4 = vector.shape_cast %3 : vector<1x8x16xf32> to vector<8x16xf32>
    %5 = arith.truncf %4 : vector<8x16xf32> to vector<8x16xbf16>
    %cst = arith.constant dense<0.000000e+00> : vector<16x16xf32>
    %6 = tpu.matmul %0, %5, %cst {dimension_numbers = #tpu.dot_dimension_numbers<[1], [0], [0], [1], [0, 0, 1, 1], [], []>} : vector<16x8xbf16>, vector<8x16xbf16>, vector<16x16xf32> -> vector<16x16xf32>
    %7 = vector.broadcast %1 : vector<16x1xf32> to vector<16x16xf32>
    %8 = arith.addf %6, %7 : vector<16x16xf32>
    %9 = vector.extract_strided_slice %8 {offsets = [0, 0], sizes = [8, 16], strides = [1, 1]} : vector<16x16xf32> to vector<8x16xf32>
    %cst_8 = arith.constant 0.000000e+00 : f32
    %10 = vector.broadcast %cst_8 : f32 to vector<8x16xf32>
    %11 = arith.maximumf %9, %10 : vector<8x16xf32>
    %12 = vector.extract_strided_slice %8 {offsets = [8, 0], sizes = [8, 16], strides = [1, 1]} : vector<16x16xf32> to vector<8x16xf32>
    %13 = arith.negf %12 : vector<8x16xf32>
    %14 = math.exp %13 : vector<8x16xf32>
    %cst_9 = arith.constant 1.000000e+00 : f32
    %15 = vector.broadcast %cst_9 : f32 to vector<8x16xf32>
    %16 = arith.addf %15, %14 : vector<8x16xf32>
    %17 = arith.divf %15, %16 : vector<8x16xf32>
    %cst_10 = arith.constant 0.000000e+00 : f32
    %18 = vector.broadcast %cst_10 : f32 to vector<8x1xf32>
    %cst_11 = arith.constant 0.000000e+00 : f32
    %19 = vector.broadcast %cst_11 : f32 to vector<8x1xf32>
    %20 = tpu.concatenate %18, %11, %19 in 1 : vector<8x1xf32>, vector<8x16xf32>, vector<8x1xf32> -> vector<8x18xf32>
    %21 = vector.extract_strided_slice %20 {offsets = [0, 0], sizes = [8, 16], strides = [1, 1]} : vector<8x18xf32> to vector<8x16xf32>
    %22 = arith.truncf %21 : vector<8x16xf32> to vector<8x16xbf16>
    %c0_12 = arith.constant 0 : index
    %c0_13 = arith.constant 0 : index
    %c0_14 = arith.constant 0 : index
    %23 = vector.load %arg4[%c0_12, %c0_13, %c0_14] : memref<3x8x8xbf16, #tpu.memory_space<vmem>>, vector<1x8x8xbf16>
    %24 = vector.shape_cast %23 : vector<1x8x8xbf16> to vector<8x8xbf16>
    %cst_15 = arith.constant dense<0.000000e+00> : vector<8x16xf32>
    %25 = tpu.matmul %24, %22, %cst_15 {dimension_numbers = #tpu.dot_dimension_numbers<[1], [0], [0], [1], [0, 0, 1, 1], [], []>} : vector<8x8xbf16>, vector<8x16xbf16>, vector<8x16xf32> -> vector<8x16xf32>
    %26 = vector.extract_strided_slice %20 {offsets = [0, 1], sizes = [8, 16], strides = [1, 1]} : vector<8x18xf32> to vector<8x16xf32>
    %27 = arith.truncf %26 : vector<8x16xf32> to vector<8x16xbf16>
    %c1 = arith.constant 1 : index
    %c0_16 = arith.constant 0 : index
    %c0_17 = arith.constant 0 : index
    %28 = vector.load %arg4[%c1, %c0_16, %c0_17] : memref<3x8x8xbf16, #tpu.memory_space<vmem>>, vector<1x8x8xbf16>
    %29 = vector.shape_cast %28 : vector<1x8x8xbf16> to vector<8x8xbf16>
    %cst_18 = arith.constant dense<0.000000e+00> : vector<8x16xf32>
    %30 = tpu.matmul %29, %27, %cst_18 {dimension_numbers = #tpu.dot_dimension_numbers<[1], [0], [0], [1], [0, 0, 1, 1], [], []>} : vector<8x8xbf16>, vector<8x16xbf16>, vector<8x16xf32> -> vector<8x16xf32>
    %31 = arith.addf %25, %30 : vector<8x16xf32>
    %32 = vector.extract_strided_slice %20 {offsets = [0, 2], sizes = [8, 16], strides = [1, 1]} : vector<8x18xf32> to vector<8x16xf32>
    %33 = arith.truncf %32 : vector<8x16xf32> to vector<8x16xbf16>
    %c2 = arith.constant 2 : index
    %c0_19 = arith.constant 0 : index
    %c0_20 = arith.constant 0 : index
    %34 = vector.load %arg4[%c2, %c0_19, %c0_20] : memref<3x8x8xbf16, #tpu.memory_space<vmem>>, vector<1x8x8xbf16>
    %35 = vector.shape_cast %34 : vector<1x8x8xbf16> to vector<8x8xbf16>
    %cst_21 = arith.constant dense<0.000000e+00> : vector<8x16xf32>
    %36 = tpu.matmul %35, %33, %cst_21 {dimension_numbers = #tpu.dot_dimension_numbers<[1], [0], [0], [1], [0, 0, 1, 1], [], []>} : vector<8x8xbf16>, vector<8x16xbf16>, vector<8x16xf32> -> vector<8x16xf32>
    %37 = arith.addf %31, %36 : vector<8x16xf32>
    %38 = vector.broadcast %2 : vector<8x1xf32> to vector<8x16xf32>
    %39 = arith.addf %37, %38 : vector<8x16xf32>
    %cst_22 = arith.constant 0.000000e+00 : f32
    %40 = vector.broadcast %cst_22 : f32 to vector<8x16xf32>
    %41 = arith.maximumf %39, %40 : vector<8x16xf32>
    %42 = arith.mulf %4, %17 : vector<8x16xf32>
    %43 = arith.addf %42, %41 : vector<8x16xf32>
    %c0_23 = arith.constant 0 : index
    %c0_24 = arith.constant 0 : index
    %c0_25 = arith.constant 0 : index
    %44 = vector.load %arg7[%c0_23, %c0_24, %c0_25] : memref<1x8x16xf32, #tpu.memory_space<vmem>>, vector<1x8x16xf32>
    %45 = vector.shape_cast %44 : vector<1x8x16xf32> to vector<8x16xf32>
    %46 = vector.shape_cast %43 : vector<8x16xf32> to vector<1x8x16xf32>
    tpu.vector_store %arg7[%c0_23, %c0_24, %c0_25], %46 {strides = array<i32>} : memref<1x8x16xf32, #tpu.memory_space<vmem>>, vector<1x8x16xf32>,
    return
  }
  func.func @transform_0(%arg0: i32) -> (i32, i32, i32) {
    %c0_i32 = arith.constant 0 : i32
    %c0_i32_0 = arith.constant 0 : i32
    %c0_i32_1 = arith.constant 0 : i32
    return %arg0, %c0_i32, %c0_i32_0 : i32, i32, i32
  }
  func.func @transform_1(%arg0: i32) -> (i32, i32) {
    %c0_i32 = arith.constant 0 : i32
    %c0_i32_0 = arith.constant 0 : i32
    %c0_i32_1 = arith.constant 0 : i32
    return %c0_i32, %c0_i32_0 : i32, i32
  }
  func.func @transform_2(%arg0: i32) -> (i32, i32) {
    %c0_i32 = arith.constant 0 : i32
    %c0_i32_0 = arith.constant 0 : i32
    %c0_i32_1 = arith.constant 0 : i32
    return %c0_i32, %c0_i32_0 : i32, i32
  }
  func.func @transform_3(%arg0: i32) -> (i32, i32, i32) {
    %c0_i32 = arith.constant 0 : i32
    %c0_i32_0 = arith.constant 0 : i32
    %c0_i32_1 = arith.constant 0 : i32
    %c0_i32_2 = arith.constant 0 : i32
    return %c0_i32, %c0_i32_0, %c0_i32_1 : i32, i32, i32
  }
  func.func @transform_4(%arg0: i32) -> (i32, i32) {
    %c0_i32 = arith.constant 0 : i32
    %c0_i32_0 = arith.constant 0 : i32
    %c0_i32_1 = arith.constant 0 : i32
    return %c0_i32, %c0_i32_0 : i32, i32
  }
  func.func @transform_5(%arg0: i32) -> (i32, i32, i32) {
    %c0_i32 = arith.constant 0 : i32
    %c0_i32_0 = arith.constant 0 : i32
    %c0_i32_1 = arith.constant 0 : i32
    %c0_i32_2 = arith.constant 0 : i32
    return %c0_i32, %c0_i32_0, %c0_i32_1 : i32, i32, i32
  }
  func.func @transform_6(%arg0: i32) -> (i32, i32, i32) {
    %c0_i32 = arith.constant 0 : i32
    %c0_i32_0 = arith.constant 0 : i32
    %c0_i32_1 = arith.constant 0 : i32
    return %arg0, %c0_i32, %c0_i32_0 : i32, i32, i32
  }
}

</mosaic_0001>

<bundles_post_ra>
// kernel: tpu_custom_call.1
= control target key start
LH: loop header
LB: loop body
LE: loop exit
PB: predicated region body
PF: predicated region fallthrough
CT: control target
= control target key end

     0   :  { %11 = vsyncpa [#allocation3], 0  ;;  %s914_s0 = inlined_call_operand.vmem [shape: f32[2,8,16], index: 0, kind: input, shape index: {}]   ;;  %s915_s1 = inlined_call_operand.vmem [shape: bf16[16,8], index: 1, kind: input, shape index: {}]   ;;  %s916_s2 = inlined_call_operand.vmem [shape: f32[16,1], index: 2, kind: input, shape index: {}]   ;;  %s917_s3 = inlined_call_operand.vmem [shape: bf16[3,8,8], index: 3, kind: input, shape index: {}]   ;;  %s918_s4 = inlined_call_operand.vmem [shape: f32[8,1], index: 4, kind: input, shape index: {}]   ;;  %s919_s5 = inlined_call_operand.vmem [shape: f32[3,1,16], index: 5, kind: input, shape index: {}]   ;;  %s920_s6 = inlined_call_operand.hbm [shape: f32[2,8,16], index: 6, kind: output, shape index: {}]  }
   0x1   :  { %13 = vsyncpa [#allocation3 + $0x1], 0  ;;  %s776_s21 = smov 0   ;;  %s778_s22 = smov 0  }
   0x2   :  { %s780_s23 = smov 0   ;;  %s782_s24 = smov 0  }
   0x3 LB: > { %s797_s5 = sadd.s32 4294967295, %s732_s24   ;;  %s568_s25 = sadd.s32 4294967294, %s732_s24   ;;  %s732_s24 = sphi %s782_s24, %s926_s24   ;;  %s728_s23 = sphi %s780_s23, %s925_s23   ;;  %s724_s22 = sphi %s778_s22, %s924_s22   ;;  %s720_s21 = sphi %s776_s21, %s923_s21  }
   0x4   : > { %s801_s26 = sadd.s32 1, %s732_s24   ;;  %s157_s27 = sadd.s32 1, %s728_s23 }
   0x5   : > { %s154_s28 = ssub.s32 %s732_s24, %s801_s26  ;;  %p167_p0 = scmp.ne.s32.totalorder %s728_s23, %s724_s22 }
   0x6   : > { %p155_p1 = scmp.eq.s32.totalorder %s154_s28, 0  ;;  %p168_p2 = scmp.eq.s32.totalorder %s797_s5, 1 }
   0x7   : > { %p173_p3 = scmp.ne.s32.totalorder %s724_s22, %s720_s21  ;;  %p174_p4 = scmp.eq.s32.totalorder %s568_s25, 1 }
   0x8   : > { %s812_s29 = scalar_select %p155_p1, %s728_s23, %s157_s27  }
   0x9   : > { %p814_p5 = por %p168_p2, %p167_p0  ;;  %p818_p6 = por %p174_p4, %p173_p3 }
   0xa   : > { %p571_p7 = scmp.ge.s32.totalorder %s732_s24, 1  ;;  %p214_p8 = scmp.lt.s32.totalorder %s732_s24, 3 }
   0xc   : > { %p215_p9 = pnand %p571_p7, %p214_p8 }
   0xd   : > { %p243_p10 = scmp.lt.s32.totalorder (!%p215_p9), %s797_s5, 1  ;;  %v734_v0 = vmov (!%p215_p9), 0.0   ;;  %vm735_vm0 = vmmov (!%p215_p9), 0   ;;  %v250_v1 = vld [vmem:[%s916_s2] sm:$0xff] (!%p215_p9)  ;;  %v736_v2 = vmov (!%p215_p9), 0   ;;  %vm274_vm1 = vcmask (!%p215_p9), 1043456  }
   0xe   : > { %218 = sbr.rel (%p215_p9) target bundleno = 728 (0x2d8), region = 44  ;;  %594 = vmatprep.subr.bf16.mxu0 (!%p215_p9), %v734_v0  ;;  %596 = vmatprep.mubr.msk.bf16.mxu0 (!%p215_p9), %vm735_vm0, %v734_v0  ;;  %v665_v6 = vld [vmem:[%s915_s1] sm:$0xff] (!%p215_p9)   ;;  %vm270_vm2 = vcmask (!%p215_p9), 64512   ;;  %s737_s17 = smov (!%p215_p9), 1   ;;  %v251_v14 = vld [vmem:[%s916_s2 + $0x8] sm:$0xff] (!%p215_p9)  ;;  %vm330_vm3 = vcmask (!%p215_p9), 7168  }
   0xf   : > { %663 = vset.pattern.permute.xlu0 (!%p215_p9), %v736_v2  ;;  %600 = vmatprep.subr.bf16.mxu1 (!%p215_p9), %v734_v0  ;;  %vm332_vm4 = vcmask (!%p215_p9), 138240   ;;  %s738_s20 = smov (!%p215_p9), 127   ;;  %v335_v20 = vld [vmem:[%s917_s3] sm:$0xf] (!%p215_p9)  ;;  %s739_s28 = smov (!%p215_p9), 126   ;;  %vm493_vm5 = vcmask (!%p215_p9), 130048  }
  0x10   : > { %257 = vperm.xlu0 (!%p215_p9), %663, %v250_v1   ;;  %602 = vmatprep.mubr.msk.bf16.mxu1 (!%p215_p9), %vm735_vm0, %v734_v0  ;;  %v252_v21 = vld [vmem:[%s918_s4] sm:$0xff] (!%p215_p9)  ;;  %v580_v27 = vld [vmem:[%s917_s3 + $0x8] sm:$0xf] (!%p215_p9)  ;;  %s583_s16 = sshll.u32 (!%p215_p9), %s797_s5, 7 }
  0x11   : > { %664 = vset.pattern.permute.xlu1 (!%p215_p9), %v736_v2  ;;  %v577_v24 = vld [vmem:[%s917_s3 + $0x4] sm:$0xf] (!%p215_p9)  ;;  %s872_s25 = scalar_lea.hbm (!%p215_p9), %s920_s6, %s583_s16 }
  0x15   : > { %s244_s10 = scalar_select %p243_p10, %s797_s5, 1 }
  0x17   : > { %s573_s11 = sshll.u32 %s244_s10, 3 }
  0x18   : > { %s246_s14 = scalar_lea.vmem %s914_s0, %s573_s11 }
  0x19   : > { %v834_v3 = vld [vmem:[%s246_s14] sm:$0xff]  ;;  %s240_s14 = sand.u32 1, %s724_s22  }
  0x1a   : > { %v254_v4 = vpack.c.bf16 %v834_v3, %v834_v3  ;;  %s572_s15 = sshll.u32 %s240_s14, 3  ;;  %s496_s27 = scalar_lea.sflag [#allocation3], %s240_s14 }
  0x1c   : > { %v276_v5 = vsel %vm274_vm1, %v254_v4, 0 }
  0x1d   : > { %595 = vmatpush3.bf16.msra.mxu0 %v276_v5 }
  0x1e   : > { %606 = vmatprep.subr.bf16.mxu0 %v734_v0 }
  0x20   : > { %597 = vmatmul.mubr.msk.bf16.vlgmr.msra.gmra.mrb[0].mxu0 %vm270_vm2, %v665_v6 }
  0x21   : > { %608 = vmatprep.mubr.msk.bf16.mxu0 %vm735_vm0, %v734_v0 }
  0x8f   : > { %v258_v7 = vpop.permute.xlu0 %257 }
  0xf3   : > { %v312_v8 = vpop.f32.mrb[0].mxu0 }
  0xf4   : > { %v313_v9 = vadd.f32 %v312_v8, %v258_v7  ;;  %v598_v10 = vpop.f32.mrb[1].mxu0 }
  0xf5   : > { %v315_v11 = vpop.f32.mrb[2].mxu0 }
  0xf6   : > { %v319_v12 = vmax.f32 %v313_v9, 0.0  ;;  %v599_v13 = vpop.f32.mrb[3].mxu0 }
  0xf8   : > { %327 = vrot.lane.b32.xlu0 %v319_v12, %s737_s17  ;;  %s242_s17 = scalar_lea.vmem [#allocation2], %s572_s15 }
  0xf9   : > { %s509_s18 = sshll.u32 %s242_s17, 4  ;;  %s874_s18 = int_to_ptr.vmem [resolvable:$true] %s509_s18 }
  0xfa   : > { %s670_s5 = scalar_lea.vmem %s874_s18, 128 }
  0xfb   : > { %p671_p11 = scmp.ne.s32.totalorder %s874_s18, %s670_s5 }
  0xfc   : > { %262 = vperm.xlu0 %663, %v251_v14  }
  0xfd   : > { %p672_p12 = pnand %p671_p11, %p814_p5 }
  0xff   : > { %p673_p13 = pneg %p672_p12 }
 0x16a   : > { %v328_v15 = vpop.permute.xlu0 %327 }
 0x16b   : > { %v331_v16 = vsel %vm330_vm3, 0.0, %v328_v15 }
 0x16c   : > { %v333_v17 = vsel %vm332_vm4, %v331_v16, 0.0 }
 0x16d   : > { %v334_v18 = vpack.c.bf16 %v333_v17, %v333_v17 }
 0x16f   : > { %339 = vrot.lane.b32.xlu1 %v334_v18, %s738_s20  ;;  %v391_v19 = vsel %vm274_vm1, %v334_v18, 0 }
 0x170   : > { %607 = vmatpush3.bf16.msra.mxu0 %v391_v19 }
 0x173   : > { %435 = vrot.lane.b32.xlu1 %v334_v18, %s739_s28  ;;  %609 = vmatmul.mubr.msk.bf16.vlgmr.msra.gmra.mrb[4].mxu0 %vm270_vm2, %v335_v20  ;;  %s740_s28 = smov [#allocation2]  }
 0x174   : > { %s674_s8 = sshll.u32 %s740_s28, 4  ;;  %s675_s8 = int_to_ptr.vmem [resolvable:$false] %s674_s8 }
 0x175   : > { %s676_s9 = scalar_lea.vmem %s675_s8, 256  ;;  %p677_p0 = scmp.lt.s32.totalorder %s874_s18, %s675_s8 }
 0x176   : > { %p678_p1 = scmp.lt.s32.totalorder %s676_s9, %s670_s5 }
 0x177   : > { %486 = vperm.xlu1 %664, %v252_v21  }
 0x178   : > { %p679_p2 = por %p678_p1, %p677_p0 }
 0x17a   : > { %p680_p3 = pnand %p679_p2, %p673_p13 }
 0x17b   : > { %v263_v32 = vpop.permute.xlu0 %262 }
 0x17c   : > { %v316_v33 = vadd.f32 %v315_v11, %v263_v32 }
 0x17e   : > { %v576_v34 = vmul.f32 -1.442695, %v316_v33 }
 0x180   : > { %666 = vpow2.f32 %v576_v34 }
 0x18a   : > { %v667_v35 = vpop.eup %666 }
 0x18b   : > { %v323_v36 = vadd.f32 1.0, %v667_v35 }
 0x18d   : > { %668 = vrcp.f32 %v323_v36 }
 0x197   : > { %v669_v46 = vpop.eup %668 }
 0x198   : > { %v491_v51 = vmul.f32 %v669_v46, %v834_v3 }
 0x1e1   : > { %v340_v22 = vpop.permute.xlu1 %339 }
 0x1e2   : > { %v345_v23 = vsel %vm274_vm1, %v340_v22, 0 }
 0x1e3   : > { %601 = vmatpush3.bf16.msra.mxu1 %v345_v23 }
 0x1e4   : > { %612 = vmatprep.subr.bf16.mxu1 %v734_v0 }
 0x1e5   : > { %v436_v25 = vpop.permute.xlu1 %435 }
 0x1e6   : > { %v441_v26 = vsel %vm274_vm1, %v436_v25, 0  ;;  %603 = vmatmul.mubr.msk.bf16.vlgmr.msra.gmra.mrb[0].mxu1 %vm270_vm2, %v577_v24 }
 0x1e7   : > { %613 = vmatpush3.bf16.msra.mxu1 %v441_v26  ;;  %614 = vmatprep.mubr.msk.bf16.mxu1 %vm735_vm0, %v734_v0 }
 0x1ee   : > { %615 = vmatmul.mubr.msk.bf16.vlgmr.msra.gmra.mrb[4].mxu1 %vm270_vm2, %v580_v27 }
 0x1f6   : > { %v487_v43 = vpop.permute.xlu1 %486 }
 0x246   : > { %v427_v28 = vpop.f32.mrb[4].mxu0 }
 0x247   : > { %v610_v29 = vpop.f32.mrb[5].mxu0 }
 0x248   : > { %v430_v30 = vpop.f32.mrb[6].mxu0 }
 0x249   : > { %v611_v31 = vpop.f32.mrb[7].mxu0 }
 0x2b9   : > { %v381_v37 = vpop.f32.mrb[0].mxu1 }
 0x2ba   : > { %v604_v38 = vpop.f32.mrb[1].mxu1  ;;  %v428_v39 = vadd.f32 %v427_v28, %v381_v37 }
 0x2bb   : > { %v384_v40 = vpop.f32.mrb[2].mxu1 }
 0x2bc   : > { %v605_v41 = vpop.f32.mrb[3].mxu1 }
 0x2c1   : > { %v477_v42 = vpop.f32.mrb[4].mxu1 }
 0x2c2   : > { %v483_v44 = vadd.f32 %v477_v42, %v428_v39  ;;  %v616_v45 = vpop.f32.mrb[5].mxu1 }
 0x2c3   : > { %v480_v47 = vpop.f32.mrb[6].mxu1 }
 0x2c4   : > { %v489_v48 = vadd.f32 %v487_v43, %v483_v44  ;;  %v617_v49 = vpop.f32.mrb[7].mxu1 }
 0x2c6   : > { %v490_v50 = vmax.f32 %v489_v48, 0.0 }
 0x2c8   : > { %v492_v52 = vadd.f32 %v491_v51, %v490_v50 }
 0x2ca   : > { %494 = vst.msk [vmem:[%s242_s17] sm:$0xff] %vm493_vm5, %v492_v52 }
 0x2cb   : > { %683 = shalt.err (!%p680_p3)
}
 0x2cc   : > { %s684_s10 = scalar_lea.hbm %s872_s25, 128  ;;  %s688_s13 = scalar_lea.hbm %s920_s6, 256 }
 0x2cd   : > { %p685_p4 = scmp.ne.s32.totalorder %s872_s25, %s684_s10  ;;  %p689_p9 = scmp.lt.u32.totalorder %s872_s25, %s920_s6 }
 0x2ce   : > { %p690_p10 = scmp.lt.u32.totalorder %s688_s13, %s684_s10  ;;  %p692_p12 = scmp.lt.u32.totalorder %s684_s10, %s872_s25 }
 0x2cf   : > { %p686_p7 = pnand %p685_p4, %p814_p5 }
 0x2d0   : > { %p691_p11 = por %p690_p10, %p689_p9 }
 0x2d1   : > { %p687_p8 = pneg %p686_p7 }
 0x2d2   : > { %p693_p13 = por %p692_p12, %p691_p11 }
 0x2d4   : > { %p694_p0 = pnand %p693_p13, %p687_p8 }
 0x2d6   : > { %697 = shalt.err (!%p694_p0)
}
 0x2d7   : > { %618 = dma.vmem_to_hbm [thread:$0]  (%p814_p5), %s874_s18, 128, %s872_s25, %s496_s27  }
 0x2d8 PF: > { %p624_p1 = scmp.ge.s32.totalorder %s732_s24, 2  ;;  %s521_s16 = sand.u32 1, %s720_s21  }
 0x2d9   : > { %s522_s17 = scalar_lea.sflag [#allocation3], %s521_s16 }
 0x2da   : > { %p621_p2 = pnand %p624_p1, %p818_p6 }
 0x2dc   : > { %715 = dma.done.wait (!%p621_p2), %s522_s17, 128  }
 0x2dd   : > { %717 = vsyncadd (!%p621_p2), %s522_s17, 4294967168  ;;  %p16_p3 = scmp.ge.s32.totalorder %s801_s26, 4   ;;  %s923_s21 = smov %s724_s22 }
 0x2de   : > { %s924_s22 = smov %s728_s23  ;;  %s925_s23 = smov %s812_s29 }
 0x2df   : > { %s926_s24 = smov %s801_s26  ;;  %18 = sbr.rel (!%p16_p3) target bundleno = 3 (0x3), region = 81 }
 0x2e6   :  { %527 = vsyncpa [#allocation3], 1 }
 0x2e7   :  { %529 = vsyncpa [#allocation3 + $0x1], 1 }

</bundles_post_ra>
